<compile_context>
chip_gen: v6e
topology: v6e:2x2x1
jax: 0.10.0
libtpu: 0.0.40
codegen_flags: <defaults>
</compile_context>

<pallas_src>
import jax
import jax.numpy as jnp
import numpy as np
from jax.experimental import pallas as pl
from jax.experimental.pallas import tpu as pltpu

_EPS = 1e-5
_MIN_GRID_STEPS = 8   # >=4 steps per TensorCore on v7x (2 TCs); pipeline depth elsewhere


def _round_up(x, m):
    return (x + m - 1) // m * m


def _make_kernel(cin, cskip, cmid, cout):
    allc = cin + cmid

    def kernel(x_ref, skip_ref, bn_ref, w1p_ref, w2_ref, o_ref, cat_ref):
        # x_ref    : (cin,   T)       spatial-on-lanes block of x (f32 or bf16)
        # skip_ref : (cskip, T)       spatial-on-lanes block of skipx
        # bn_ref   : (cskip+allc, 2)  packed folded-BN [scale, shift] columns
        # w1p_ref  : (allc, cskip)    conv1 1x1 weight, zero-padded: rows [0:cin)=0
        # w2_ref   : (cout, allc)     conv2 1x1 weight (columns in cat order)
        # o_ref    : (cout,  T)
        # cat_ref  : (allc,  T)       VMEM scratch holding cat((x, conv1(skip)), C)
        s1 = bn_ref[0:cskip, 0:1]
        t1 = bn_ref[0:cskip, 1:2]
        s2 = bn_ref[cskip:cskip + allc, 0:1]
        t2 = bn_ref[cskip:cskip + allc, 1:2]

        # --- BNNLAConv #1 on the skip branch: folded-BN -> ReLU -> 1x1 conv ---
        skip = skip_ref[...].astype(jnp.float32)
        h1 = jnp.maximum(skip * s1 + t1, 0.0)                          # (cskip, T)
        # Padded weight: rows [cin:allc) carry conv1's output, rows [0:cin) are 0.
        y1p = jnp.dot(w1p_ref[...], h1,
                      preferred_element_type=jnp.float32)              # (allc, T)

        # --- Materialize cat((x, y1), C) in VMEM with aligned stores only ---
        cat_ref[...] = y1p                                             # rows cin..: y1
        cat_ref[0:cin, :] = x_ref[...].astype(jnp.float32)             # rows 0..cin-1: x

        # --- BNNLAConv #2 on the packed cat: one VALU pass + ONE MXU dot ---
        h2 = jnp.maximum(cat_ref[...] * s2 + t2, 0.0)                  # (allc, T)
        out = jnp.dot(w2_ref[...], h2,
                      preferred_element_type=jnp.float32)              # (cout, T)
        o_ref[...] = out.astype(o_ref.dtype)

    return kernel


def cat_fusion_2d(x_nchw, skip_nchw, params, *, lane_tile=32768, out_dtype=None):
    """Fused CatFusion2d forward.  Streams x/skip in their own dtype (f32 or
    bf16); BN/ReLU and matmul accumulation are f32 inside the kernel."""
    (g1, b1, m1, v1, W1, g2, b2, m2, v2, W2) = params
    N, Cin, H, Wd = x_nchw.shape
    Cskip = skip_nchw.shape[1]
    Cout, allC = W2.shape
    Cmid = W1.shape[0]                      # conv1 output channels (== Cin)
    assert allC == Cin + Cmid
    HW = H * Wd
    if out_dtype is None:
        out_dtype = x_nchw.dtype

    # Fold eval-mode BatchNorm into per-channel scale/shift.
    s1 = g1 / jnp.sqrt(v1 + _EPS)
    t1 = b1 - m1 * s1
    s2 = g2 / jnp.sqrt(v2 + _EPS)
    t2 = b2 - m2 * s2

    # Single packed BN-param array: rows [skip-chan | cat-chan(x first, then y1)],
    # col 0 = scale, col 1 = shift.
    bn_pack = jnp.concatenate(
        [jnp.stack([s1, t1], axis=1), jnp.stack([s2, t2], axis=1)],
        axis=0).astype(jnp.float32)                        # (Cskip + allC, 2)

    # conv1 weight zero-padded to (allC, Cskip) so its MXU output lands directly
    # in the bottom rows of the cat buffer (done host-side, free).
    w1p = jnp.zeros((allC, Cskip), jnp.float32).at[Cin:, :].set(
        W1.astype(jnp.float32))
    w2 = W2.astype(jnp.float32)                            # (Cout, allC)

    # Spatial-on-lanes layout: NCHW -> (N, C, H*W) (free reshape, no transpose,
    # no dtype change -> bf16 inputs stream as bf16).
    x3 = x_nchw.reshape(N, Cin, HW)
    s3 = skip_nchw.reshape(N, Cskip, HW)

    # Lane tile: 128-aligned, clamped to the spatial extent; shrink so the grid
    # has >= _MIN_GRID_STEPS steps (both v7x TensorCores busy + pipeline depth).
    lane_tile = _round_up(max(128, int(lane_tile)), 128)
    lane_tile = min(lane_tile, _round_up(HW, 128))
    tiles_wanted = max(1, -(-_MIN_GRID_STEPS // N))
    lane_tile = min(lane_tile, _round_up(-(-HW // tiles_wanted), 128))

    n_tiles = pl.cdiv(HW, lane_tile)
    grid = (N, n_tiles)
    # NOTE: if lane_tile does not divide HW, the last block is a boundary block:
    # Pallas masks the out-of-range lanes on the output store, and the garbage
    # lanes read on input only feed those masked lanes (per-lane elementwise +
    # channel-only contraction), so no wrapper-side pad/slice is needed.

    kernel = _make_kernel(Cin, Cskip, Cmid, Cout)

    def data_spec(c):
        return pl.BlockSpec((None, c, lane_tile), lambda n, j: (n, 0, j))

    def const_spec(shape):
        return pl.BlockSpec(shape, lambda n, j: (0, 0))

    out3 = pl.pallas_call(
        kernel,
        out_shape=jax.ShapeDtypeStruct((N, Cout, HW), out_dtype),
        grid_spec=pltpu.PrefetchScalarGridSpec(
            num_scalar_prefetch=0,
            grid=grid,
            in_specs=[
                data_spec(Cin),              # x block        (Cin,  lane_tile)
                data_spec(Cskip),            # skip block     (Cskip, lane_tile)
                const_spec(bn_pack.shape),   # packed BN scale/shift
                const_spec(w1p.shape),       # padded conv1 weight
                const_spec(w2.shape),        # conv2 weight
            ],
            out_specs=data_spec(Cout),       # output block   (Cout, lane_tile)
            scratch_shapes=[pltpu.VMEM((allC, lane_tile), jnp.float32)],
        ),
        compiler_params=pltpu.CompilerParams(
            dimension_semantics=("parallel", "parallel"),
            vmem_limit_bytes=64 * 1024 * 1024),   # v5e default is 16 MiB; big tiles need more
    )(x3, s3, bn_pack, w1p, w2)

    return out3.reshape(N, Cout, H, Wd)


def ref_forward(x, skipx, params):
    """Pure-JAX reference matching the PyTorch (eval-mode) forward, incl. the cat."""
    (g1, b1, m1, v1, W1, g2, b2, m2, v2, W2) = params

    def bnnla(z, g, b, m, v, Wc):
        s = (g / jnp.sqrt(v + _EPS))[None, :, None, None]
        zn = (z - m[None, :, None, None]) * s + b[None, :, None, None]
        zn = jnp.maximum(zn, 0.0)
        return jnp.einsum('nchw,oc->nohw', zn, Wc)

    s = bnnla(skipx, g1, b1, m1, v1, W1)
    cat = jnp.concatenate([x, s], axis=1)
    return bnnla(cat, g2, b2, m2, v2, W2)


if __name__ == "__main__":
    # skipChans > inChans -> conv1 = BNNLAConv(skipC, inC), allChans = 2*inC
    N, inC, skipC, outC, H, W = 2, 4, 8, 6, 16, 16
    allC = 2 * inC

    key = jax.random.PRNGKey(0)
    kx, ks, kw1, kw2 = jax.random.split(key, 4)
    x = jax.random.normal(kx, (N, inC, H, W), dtype=jnp.float32)
    skipx = jax.random.normal(ks, (N, skipC, H, W), dtype=jnp.float32)

    # Deterministic synthetic parameters.
    # BNNLAConv #1: BatchNorm2d(skipC) + ReLU + Conv2d(skipC -> inC, 1x1, bias=False)
    g1 = jnp.linspace(0.5, 1.5, skipC, dtype=jnp.float32)
    b1 = jnp.linspace(-0.2, 0.2, skipC, dtype=jnp.float32)
    m1 = jnp.linspace(-0.1, 0.1, skipC, dtype=jnp.float32)
    v1 = jnp.linspace(0.5, 1.5, skipC, dtype=jnp.float32)
    W1 = 0.1 * jax.random.normal(kw1, (inC, skipC), dtype=jnp.float32)

    # BNNLAConv #2: BatchNorm2d(2*inC) + ReLU + Conv2d(2*inC -> outC, 1x1, bias=False)
    g2 = jnp.linspace(0.8, 1.2, allC, dtype=jnp.float32)
    b2 = jnp.linspace(-0.1, 0.1, allC, dtype=jnp.float32)
    m2 = jnp.linspace(-0.05, 0.05, allC, dtype=jnp.float32)
    v2 = jnp.linspace(0.7, 1.3, allC, dtype=jnp.float32)
    W2 = 0.1 * jax.random.normal(kw2, (outC, allC), dtype=jnp.float32)

    params = (g1, b1, m1, v1, W1, g2, b2, m2, v2, W2)

    # f32 streaming path: bit-for-bit (within MXU f32 decomposition tolerance).
    out = jax.block_until_ready(cat_fusion_2d(x, skipx, params))
    ref = ref_forward(x, skipx, params)
    np.testing.assert_allclose(np.asarray(out), np.asarray(ref), rtol=1e-4, atol=1e-4)

    # bf16 streaming path: halves HBM traffic; looser tolerance for bf16 rounding.
    x_bf = x.astype(jnp.bfloat16)
    s_bf = skipx.astype(jnp.bfloat16)
    out_bf = jax.block_until_ready(cat_fusion_2d(x_bf, s_bf, params))
    ref_bf = ref_forward(x_bf.astype(jnp.float32), s_bf.astype(jnp.float32), params)
    np.testing.assert_allclose(np.asarray(out_bf.astype(jnp.float32)),
                               np.asarray(ref_bf), rtol=2e-2, atol=2e-2)

    print("KERNEL_OK")
</pallas_src>

<mosaic_0001>
module attributes {stable_mosaic.version = 11 : i64} {
  func.func @kernel(%arg0: i32, %arg1: i32, %arg2: memref<1x4x128xf32, #tpu.memory_space<vmem>>, %arg3: memref<1x8x128xf32, #tpu.memory_space<vmem>>, %arg4: memref<16x2xf32, #tpu.memory_space<vmem>>, %arg5: memref<8x8xf32, #tpu.memory_space<vmem>>, %arg6: memref<6x8xf32, #tpu.memory_space<vmem>>, %arg7: memref<1x6x128xf32, #tpu.memory_space<vmem>>, %arg8: memref<8x128xf32, #tpu.memory_space<vmem>>) attributes {dimension_semantics = [#tpu.dimension_semantics<parallel>, #tpu.dimension_semantics<parallel>], iteration_bounds = array<i64: 2, 2>, scalar_prefetch = 0 : i64, scratch_operands = 1 : i64, tpu.core_type = #tpu.core_type<tc>, window_params = [{transform_indices = @transform_0, window_bounds = array<i64: 1, 4, 128>}, {transform_indices = @transform_1, window_bounds = array<i64: 1, 8, 128>}, {pipeline_mode = #tpu.pipeline_mode<synchronous>, transform_indices = @transform_2, window_bounds = array<i64: 16, 2>}, {pipeline_mode = #tpu.pipeline_mode<synchronous>, transform_indices = @transform_3, window_bounds = array<i64: 8, 8>}, {pipeline_mode = #tpu.pipeline_mode<synchronous>, transform_indices = @transform_4, window_bounds = array<i64: 6, 8>}, {transform_indices = @transform_5, window_bounds = array<i64: 1, 6, 128>}]} {
    %c0 = arith.constant 0 : index
    %c0_0 = arith.constant 0 : index
    %0 = vector.load %arg4[%c0, %c0_0] : memref<16x2xf32, #tpu.memory_space<vmem>>, vector<8x1xf32>
    %c0_1 = arith.constant 0 : index
    %c1 = arith.constant 1 : index
    %1 = vector.load %arg4[%c0_1, %c1] : memref<16x2xf32, #tpu.memory_space<vmem>>, vector<8x1xf32>
    %c8 = arith.constant 8 : index
    %c0_2 = arith.constant 0 : index
    %2 = vector.load %arg4[%c8, %c0_2] : memref<16x2xf32, #tpu.memory_space<vmem>>, vector<8x1xf32>
    %c8_3 = arith.constant 8 : index
    %c1_4 = arith.constant 1 : index
    %3 = vector.load %arg4[%c8_3, %c1_4] : memref<16x2xf32, #tpu.memory_space<vmem>>, vector<8x1xf32>
    %c0_5 = arith.constant 0 : index
    %c0_6 = arith.constant 0 : index
    %c0_7 = arith.constant 0 : index
    %4 = vector.load %arg3[%c0_5, %c0_6, %c0_7] : memref<1x8x128xf32, #tpu.memory_space<vmem>>, vector<1x8x128xf32>
    %5 = vector.shape_cast %4 : vector<1x8x128xf32> to vector<8x128xf32>
    %6 = vector.broadcast %0 : vector<8x1xf32> to vector<8x128xf32>
    %7 = arith.mulf %5, %6 : vector<8x128xf32>
    %8 = vector.broadcast %1 : vector<8x1xf32> to vector<8x128xf32>
    %9 = arith.addf %7, %8 : vector<8x128xf32>
    %cst = arith.constant 0.000000e+00 : f32
    %10 = vector.broadcast %cst : f32 to vector<8x128xf32>
    %11 = arith.maximumf %9, %10 : vector<8x128xf32>
    %c0_8 = arith.constant 0 : index
    %c0_9 = arith.constant 0 : index
    %12 = vector.load %arg5[%c0_8, %c0_9] : memref<8x8xf32, #tpu.memory_space<vmem>>, vector<8x8xf32>
    %cst_10 = arith.constant dense<0.000000e+00> : vector<8x128xf32>
    %13 = tpu.matmul %12, %11, %cst_10 {dimension_numbers = #tpu.dot_dimension_numbers<[1], [0], [0], [1], [0, 0, 1, 1], [], []>} : vector<8x8xf32>, vector<8x128xf32>, vector<8x128xf32> -> vector<8x128xf32>
    %c0_11 = arith.constant 0 : index
    %c0_12 = arith.constant 0 : index
    %14 = vector.load %arg8[%c0_11, %c0_12] : memref<8x128xf32, #tpu.memory_space<vmem>>, vector<8x128xf32>
    tpu.vector_store %arg8[%c0_11, %c0_12], %13 {strides = array<i32>} : memref<8x128xf32, #tpu.memory_space<vmem>>, vector<8x128xf32>,
    %c0_13 = arith.constant 0 : index
    %c0_14 = arith.constant 0 : index
    %c0_15 = arith.constant 0 : index
    %15 = vector.load %arg2[%c0_13, %c0_14, %c0_15] : memref<1x4x128xf32, #tpu.memory_space<vmem>>, vector<1x4x128xf32>
    %16 = vector.shape_cast %15 : vector<1x4x128xf32> to vector<4x128xf32>
    %c0_16 = arith.constant 0 : index
    %c0_17 = arith.constant 0 : index
    %17 = vector.load %arg8[%c0_16, %c0_17] : memref<8x128xf32, #tpu.memory_space<vmem>>, vector<4x128xf32>
    tpu.vector_store %arg8[%c0_16, %c0_17], %16 {strides = array<i32>} : memref<8x128xf32, #tpu.memory_space<vmem>>, vector<4x128xf32>,
    %c0_18 = arith.constant 0 : index
    %c0_19 = arith.constant 0 : index
    %18 = vector.load %arg8[%c0_18, %c0_19] : memref<8x128xf32, #tpu.memory_space<vmem>>, vector<8x128xf32>
    %19 = vector.broadcast %2 : vector<8x1xf32> to vector<8x128xf32>
    %20 = arith.mulf %18, %19 : vector<8x128xf32>
    %21 = vector.broadcast %3 : vector<8x1xf32> to vector<8x128xf32>
    %22 = arith.addf %20, %21 : vector<8x128xf32>
    %cst_20 = arith.constant 0.000000e+00 : f32
    %23 = vector.broadcast %cst_20 : f32 to vector<8x128xf32>
    %24 = arith.maximumf %22, %23 : vector<8x128xf32>
    %c0_21 = arith.constant 0 : index
    %c0_22 = arith.constant 0 : index
    %25 = vector.load %arg6[%c0_21, %c0_22] : memref<6x8xf32, #tpu.memory_space<vmem>>, vector<6x8xf32>
    %cst_23 = arith.constant dense<0.000000e+00> : vector<6x128xf32>
    %26 = tpu.matmul %25, %24, %cst_23 {dimension_numbers = #tpu.dot_dimension_numbers<[1], [0], [0], [1], [0, 0, 1, 1], [], []>} : vector<6x8xf32>, vector<8x128xf32>, vector<6x128xf32> -> vector<6x128xf32>
    %c0_24 = arith.constant 0 : index
    %c0_25 = arith.constant 0 : index
    %c0_26 = arith.constant 0 : index
    %27 = vector.load %arg7[%c0_24, %c0_25, %c0_26] : memref<1x6x128xf32, #tpu.memory_space<vmem>>, vector<1x6x128xf32>
    %28 = vector.shape_cast %27 : vector<1x6x128xf32> to vector<6x128xf32>
    %29 = vector.shape_cast %26 : vector<6x128xf32> to vector<1x6x128xf32>
    tpu.vector_store %arg7[%c0_24, %c0_25, %c0_26], %29 {strides = array<i32>} : memref<1x6x128xf32, #tpu.memory_space<vmem>>, vector<1x6x128xf32>,
    return
  }
  func.func @transform_0(%arg0: i32, %arg1: i32) -> (i32, i32, i32) {
    %c0_i32 = arith.constant 0 : i32
    %c0_i32_0 = arith.constant 0 : i32
    return %arg0, %c0_i32, %arg1 : i32, i32, i32
  }
  func.func @transform_1(%arg0: i32, %arg1: i32) -> (i32, i32, i32) {
    %c0_i32 = arith.constant 0 : i32
    %c0_i32_0 = arith.constant 0 : i32
    return %arg0, %c0_i32, %arg1 : i32, i32, i32
  }
  func.func @transform_2(%arg0: i32, %arg1: i32) -> (i32, i32) {
    %c0_i32 = arith.constant 0 : i32
    %c0_i32_0 = arith.constant 0 : i32
    %c0_i32_1 = arith.constant 0 : i32
    return %c0_i32, %c0_i32_0 : i32, i32
  }
  func.func @transform_3(%arg0: i32, %arg1: i32) -> (i32, i32) {
    %c0_i32 = arith.constant 0 : i32
    %c0_i32_0 = arith.constant 0 : i32
    %c0_i32_1 = arith.constant 0 : i32
    return %c0_i32, %c0_i32_0 : i32, i32
  }
  func.func @transform_4(%arg0: i32, %arg1: i32) -> (i32, i32) {
    %c0_i32 = arith.constant 0 : i32
    %c0_i32_0 = arith.constant 0 : i32
    %c0_i32_1 = arith.constant 0 : i32
    return %c0_i32, %c0_i32_0 : i32, i32
  }
  func.func @transform_5(%arg0: i32, %arg1: i32) -> (i32, i32, i32) {
    %c0_i32 = arith.constant 0 : i32
    %c0_i32_0 = arith.constant 0 : i32
    return %arg0, %c0_i32, %arg1 : i32, i32, i32
  }
}

</mosaic_0001>

<bundles_post_ra>
// kernel: tpu_custom_call.1
= control target key start
LH: loop header
LB: loop body
LE: loop exit
PB: predicated region body
PF: predicated region fallthrough
CT: control target
= control target key end

     0   :  { %s1058_s0 = inlined_call_operand.vmem [shape: f32[2,4,256], index: 0, kind: input, shape index: {}]   ;;  %s1059_s1 = inlined_call_operand.hbm [shape: f32[2,8,256], index: 1, kind: input, shape index: {}]   ;;  %s1060_s2 = inlined_call_operand.vmem [shape: f32[16,2], index: 2, kind: input, shape index: {}]   ;;  %s1061_s3 = inlined_call_operand.hbm [shape: f32[8,8], index: 3, kind: input, shape index: {}]   ;;  %s1062_s4 = inlined_call_operand.vmem [shape: f32[6,8], index: 4, kind: input, shape index: {}]   ;;  %s1063_s5 = inlined_call_operand.vmem [shape: f32[2,6,256], index: 5, kind: output, shape index: {}]  }
   0x1   :  { %1065 = sst [smem:[#allocation10_spill]] %s1061_s3 }
   0x2   :  { %1066 = sst [smem:[#allocation11_spill]] %s1062_s4 }
   0x3   :  { %1067 = sst [smem:[#allocation12_spill]] %s1063_s5 }
   0x4   :  { %10 = vsyncpa [#allocation4], 0 }
   0x5   :  { %12 = vsyncpa [#allocation4 + $0x1], 0 }
   0x6   :  { %13 = vsyncpa [#allocation6], 0  ;;  %s898_s18 = smov 0   ;;  %s900_s19 = smov 0  }
   0x7   :  { %s902_s20 = smov 0   ;;  %s904_s21 = smov 0  }
   0x8   :  { %s906_s22 = smov 0   ;;  %s908_s23 = smov 0  }
   0x9   :  { %s910_s24 = smov 0   ;;  %s912_s25 = smov 0  }
   0xa LB: > { %s613_s26 = sadd.s32 4294967295, %s860_s25   ;;  %p81_p0 = scmp.ne.s32.totalorder %s836_s19, %s832_s18  ;;  %s860_s25 = sphi %s912_s25, %s19_s25   ;;  %s856_s24 = sphi %s910_s24, %s1084_s24   ;;  %s852_s23 = sphi %s908_s23, %s1083_s23   ;;  %s848_s22 = sphi %s906_s22, %s1082_s22   ;;  %s844_s21 = sphi %s904_s21, %s1081_s21   ;;  %s840_s20 = sphi %s902_s20, %s1080_s20   ;;  %s836_s19 = sphi %s900_s19, %s1079_s19   ;;  %s832_s18 = sphi %s898_s18, %s1078_s18  }
   0xb   : > { %p938_p1 = scmp.eq.s32.totalorder %s613_s26, 0  ;;  %p615_p2 = scmp.ge.s32.totalorder %s860_s25, 1 }
   0xc   : > { %p183_p3 = scmp.lt.s32.totalorder %s860_s25, 5  ;;  %s862_s30 = smov [#allocation5]  }
   0xd   : > { %p946_p4 = por %p938_p1, %p81_p0  ;;  %s199_s6 = sshll.u32 %s862_s30, 4  ;;  %s200_s6 = int_to_ptr.vmem [resolvable:$true] %s199_s6 }
   0xe   : > { %p950_p5 = pnand %p615_p2, %p183_p3  ;;  %s28_s7 = sadd.s32 1, %s852_s23 }
   0xf   : > { %s747_s8 = scalar_lea.vmem %s200_s6, 128  ;;  %p755_p12 = scmp.lt.s32.totalorder %s200_s6, %s200_s6 }
  0x10   : > { %p652_p6 = pneg %p950_p5  ;;  %p748_p9 = scmp.ne.s32.totalorder %s200_s6, %s747_s8 }
  0x11   : > { %p756_p13 = scmp.lt.s32.totalorder %s747_s8, %s747_s8 }
  0x12   : > { %p653_p7 = pnand %p652_p6, %p938_p1 }
  0x13   : > { %p757_p0 = por %p756_p13, %p755_p12 }
  0x14   : > { %p738_p8 = pneg %p653_p7 }
  0x16   : > { %p750_p10 = pnand %p748_p9, %p738_p8 }
  0x18   : > { %p751_p11 = pneg %p750_p10 }
  0x1a   : > { %p758_p2 = pnand %p757_p0, %p751_p11 }
  0x1c   : > { %761 = shalt.err (!%p758_p2)
}
  0x1d   : > { %s1071_s3 = sld [smem:[#allocation10_spill]]  ;;  %p29_p3 = scmp.ge.s32.totalorder %s28_s7, 2 }
  0x1e   : > { %s31_s11 = sadd.s32 1, %s856_s24  ;;  %s68_s12 = sadd.s32 1, %s840_s20 }
  0x1f   : > { %s1086_s7 = smov (%p29_p3, %s28_s7), 0  ;;  %s1088_s11 = smov (!%p29_p3, %s31_s11), %s856_s24 }
  0x20   : > { %1072 = sst [smem:[#allocation9_spill]] %s1086_s7  ;;  %p75_p6 = scmp.ne.s32.totalorder %s840_s20, %s836_s19 }
  0x21   : > { %p76_p8 = scmp.eq.s32.totalorder %s860_s25, 0  ;;  %p33_p9 = scmp.ge.s32.totalorder %s1088_s11, 2 }
  0x22   : > { %s64_s13 = ssub.s32 %s852_s23, %s1086_s7  ;;  %p661_p10 = scmp.lt.s32.totalorder %s860_s25, 4 }
  0x23   : > { %655 = dma.hbm_to_vmem [thread:$0]  (!%p653_p7), %s1071_s3, 128, %s200_s6, [#allocation6]  }
  0x24   : > { %s224_s14 = sand.u32 1, %s840_s20   ;;  %s1090_s11 = smov (%p33_p9, %s1088_s11), 0 }
  0x25   : > { %p976_p7 = por %p76_p8, %p75_p6  ;;  %s618_s16 = sshll.u32 %s224_s14, 3 }
  0x26   : > { %s63_s17 = ssub.s32 %s856_s24, %s1090_s11  ;;  %s619_s26 = sshll.u32 %s856_s24, 1 }
  0x27   : > { %s65_s18 = sor.u32 %s64_s13, %s63_s17  ;;  %s233_s30 = sadd.s32 %s852_s23, %s619_s26 }
  0x28   : > { %p66_p11 = scmp.eq.s32.totalorder %s65_s18, 0  ;;  %s620_s6 = sshll.u32 %s233_s30, 7 }
  0x29   : > { %s228_s8 = scalar_lea.vmem [#allocation3], %s618_s16  ;;  %s235_s5 = scalar_lea.hbm %s1059_s1, %s620_s6 }
  0x2a   : > { %s237_s9 = sshll.u32 %s228_s8, 4  ;;  %p994_p12 = pnand %p661_p10, %p976_p7  ;;  %s238_s9 = int_to_ptr.vmem [resolvable:$true] %s237_s9 }
  0x2b   : > { %s985_s10 = scalar_select %p66_p11, %s840_s20, %s68_s12  }
  0x2c   : > { %s225_s13 = scalar_lea.sflag [#allocation4], %s224_s14  ;;  %p764_p13 = pneg %p994_p12 }
  0x2d   : > { %s775_s17 = scalar_lea.vmem %s238_s9, 128  ;;  %s863_s12 = smov [#allocation3]  }
  0x2e   : > { %p776_p0 = scmp.ne.s32.totalorder %s238_s9, %s775_s17  ;;  %s780_s16 = sshll.u32 %s863_s12, 4  ;;  %s781_s16 = int_to_ptr.vmem [resolvable:$false] %s780_s16 }
  0x2f   : > { %s782_s3 = scalar_lea.vmem %s781_s16, 256  ;;  %p783_p6 = scmp.lt.s32.totalorder %s238_s9, %s781_s16 }
  0x30   : > { %p778_p2 = pnand %p776_p0, %p764_p13  ;;  %p784_p8 = scmp.lt.s32.totalorder %s782_s3, %s775_s17 }
  0x32   : > { %p779_p3 = pneg %p778_p2  ;;  %p785_p9 = por %p784_p8, %p783_p6 }
  0x34   : > { %p786_p11 = pnand %p785_p9, %p779_p3 }
  0x36   : > { %789 = shalt.err (!%p786_p11)
}
  0x37   : > { %659 = dma.hbm_to_vmem [thread:$0]  (!%p994_p12), %s235_s5, 128, %s238_s9, %s225_s13  }
  0x38   : > { %246 = sbr.rel (%p950_p5) target bundleno = 604 (0x25c), region = 40  ;;  %s248_s7 = sand.u32 (!%p950_p5), 1, %s836_s19  }
  0x39   : > { %s622_s14 = sshll.u32 (!%p950_p5), %s248_s7, 3  ;;  %s249_s15 = scalar_lea.sflag (!%p950_p5), [#allocation4], %s248_s7 }
  0x3a   : > { %s252_s18 = scalar_lea.vmem (!%p950_p5), [#allocation3], %s622_s14 }
  0x3d   : > { %823 = dma.done.wait (%p946_p4), %s249_s15, 128  }
  0x3e   : > { %825 = vsyncadd (%p946_p4), %s249_s15, 4294967168 }
  0x3f   : > { %827 = dma.done.wait (%p938_p1), [#allocation6], 128  }
  0x40   : > { %829 = vsyncadd (%p938_p1), [#allocation6], 4294967168  ;;  %v864_v0 = vmov 0   ;;  %v310_v1 = vld [vmem:[%s1060_s2] sm:$0xff]  ;;  %v865_v2 = vmov 1   ;;  %v866_v3 = vmov 0.0  }
  0x41   : > { %732 = vset.pattern.permute.xlu0 %v864_v0  ;;  %734 = vset.pattern.permute.xlu1 %v864_v0  ;;  %vm867_vm0 = vmmov 0   ;;  %v311_v4 = vld [vmem:[%s1060_s2 + $0x8] sm:$0xff]  ;;  %v325_v11 = vld [vmem:[#allocation5] sm:$0xff]  ;;  %vm326_vm1 = vcmask 64512   ;;  %p294_p1 = scmp.lt.s32.totalorder %s848_s22, 1  ;;  %p296_p4 = scmp.lt.s32.totalorder %s844_s21, 1 }
  0x42   : > { %315 = vperm.xlu0 %732, %v310_v1   ;;  %636 = vmatprep.subr.mxu0 %v866_v3  ;;  %v312_v6 = vld [vmem:[%s252_s18] sm:$0xff]  ;;  %s1076_s3 = sld [smem:[#allocation12_spill]] }
  0x43   : > { %638 = vmatprep.mubr.msk.f32.mxu0 %vm867_vm0, %v866_v3  ;;  %641 = vmatprep.subr.mxu1 %v866_v3  ;;  %s1092_s22 = smov (!%p294_p1, %s848_s22), 1  ;;  %s1094_s21 = smov (!%p296_p4, %s844_s21), 1 }
  0x44   : > { %643 = vmatprep.mubr.msk.f32.mxu1 %vm867_vm0, %v866_v3  ;;  %406 = vperm.xlu1 %734, %v311_v4   ;;  %s624_s27 = sshll.u32 %s1092_s22, 1  ;;  %s1075_s22 = sld [smem:[#allocation11_spill]] }
  0x45   : > { %s299_s26 = sadd.s32 %s624_s27, %s1094_s21 }
  0x46   : > { %733 = vset.pattern.permute.xlu0 %v865_v2  ;;  %s625_s30 = sshll.u32 %s299_s26, 2  ;;  %s627_s21 = sshll.u32 %s299_s26, 3 }
  0x47   : > { %320 = vperm.xlu0 %733, %v310_v1   ;;  %s301_s9 = scalar_lea.vmem %s1058_s0, %s625_s30 }
  0x48   : > { %735 = vset.pattern.permute.xlu1 %v865_v2  ;;  %v401_v12 = vld [vmem:[%s301_s9] sm:$0xf]  ;;  %s309_s7 = scalar_lea.vmem %s1076_s3, %s627_s21 }
  0x49   : > { %411 = vperm.xlu1 %735, %v311_v4  }
  0x4a   : > { %v416_v21 = vld [vmem:[%s1075_s22] sm:$0x3f] }
  0xbd   : > { %v316_v5 = vpop.permute.xlu0 %315 }
  0xbe   : > { %v318_v7 = vmul.f32 %v316_v5, %v312_v6 }
  0xbf   : > { %v407_v15 = vpop.permute.xlu1 %406 }
  0xc2   : > { %v321_v8 = vpop.permute.xlu0 %320 }
  0xc3   : > { %v323_v9 = vadd.f32 %v321_v8, %v318_v7 }
  0xc4   : > { %v412_v17 = vpop.permute.xlu1 %411 }
  0xc5   : > { %v324_v10 = vmax.f32 %v323_v9, 0.0 }
  0xc7   : > { %637 = vmatpush3.msra.mxu0 %v324_v10 }
  0xc8   : > { %639 = vmatmul.mubr.msk.f32.vlgmr.msra.gmra.mxu0 %vm326_vm1, %v325_v11 }
 0x188   : > { %v396_v13 = vpop.f32.mrf.mxu0 }
 0x189   : > { %400 = vst [vmem:[#allocation2] sm:$0xff] %v396_v13 }
 0x18a   : > { %402 = vst [vmem:[#allocation2] sm:$0xf] %v401_v12  ;;  %v640_v14 = vpop.f32.mrf.mxu0 }
 0x191   : > { %v403_v16 = vld [vmem:[#allocation2] sm:$0xff] }
 0x192   : > { %v409_v18 = vmul.f32 %v407_v15, %v403_v16 }
 0x194   : > { %v414_v19 = vadd.f32 %v412_v17, %v409_v18 }
 0x196   : > { %v415_v20 = vmax.f32 %v414_v19, 0.0 }
 0x198   : > { %642 = vmatpush3.msra.mxu1 %v415_v20 }
 0x199   : > { %644 = vmatmul.mubr.msk.f32.vlgmr.msra.gmra.mxu1 %vm326_vm1, %v416_v21 }
 0x259   : > { %v486_v22 = vpop.f32.mrf.mxu1 }
 0x25a   : > { %490 = vst [vmem:[%s309_s7] sm:$0x3f] %v486_v22 }
 0x25b   : > { %v645_v23 = vpop.f32.mrf.mxu1 }
 0x25c PF: > { %s19_s25 = sadd.s32 1, %s860_s25   ;;  %s1077_s14 = sld [smem:[#allocation9_spill]] }
 0x25d   : > { %p16_p5 = scmp.ge.s32.totalorder %s19_s25, 6   ;;  %s1078_s18 = smov %s836_s19 }
 0x25e   : > { %s1079_s19 = smov %s840_s20  ;;  %s1080_s20 = smov %s985_s10 }
 0x25f   : > { %s1081_s21 = smov %s852_s23  ;;  %s1082_s22 = smov %s856_s24 }
 0x260   : > { %s1084_s24 = smov %s1090_s11  ;;  %18 = sbr.rel (!%p16_p5) target bundleno = 10 (0xa), region = 87 }
 0x262   : > { %s1083_s23 = smov %s1077_s14 }
 0x265   :  { %518 = vsyncpa [#allocation4], 1 }
 0x266   :  { %520 = vsyncpa [#allocation4 + $0x1], 1 }
 0x267   :  { %521 = vsyncpa [#allocation6], 1 }

</bundles_post_ra>
